<compile_context>
chip_gen: v7x
topology: tpu7x:2x2x1
jax: 0.10.0
libtpu: 0.0.40
codegen_flags: <defaults>
</compile_context>

<pallas_src>
import jax
import jax.numpy as jnp
from jax.experimental import pallas as pl
from jax.experimental.pallas import tpu as pltpu

_NEG_BIG = -1e30  # logits bias for padded expert lanes (exp underflows to 0)


def _round_up(n, m):
    return ((n + m - 1) // m) * m


def _cdiv(a, b):
    return -(-a // b)


def _vmem_cap_bytes():
    """Per-generation VMEM clamp: ~48 MiB on v7x (64 MiB/TC), ~104 MiB on v5e/v6e."""
    cap = 64 << 20
    try:
        cap = int(pltpu.get_tpu_info().vmem_capacity_bytes)
    except Exception:
        pass
    return (48 << 20) if cap <= (64 << 20) else (104 << 20)


def gating_kernel(x_ref, w1_ref, b1_ref, w2_ref, b2_ref, o_ref, h_acc):
    # x: [TB, TK], w1: [TK, H], b1: [1, H] f32, w2: [H, E_pad], b2: [1, E_pad] f32
    # o: [TB, E_pad] (x dtype), h_acc: [TB, H] f32 scratch (fc1 accumulator).
    k = pl.program_id(1)

    @pl.when(k == 0)
    def _():
        h_acc[...] = jnp.zeros_like(h_acc)

    # fc1 partial product on the MXU, f32 accumulate.
    h_acc[...] += jnp.dot(x_ref[...], w1_ref[...],
                          preferred_element_type=jnp.float32)

    @pl.when(k == pl.num_programs(1) - 1)
    def _():
        # bias + relu in f32
        h = jnp.maximum(h_acc[...] + b1_ref[...], 0.0)
        # fc2: cast hidden to the weight dtype (bf16 weights -> bf16 MXU path),
        # accumulate in f32.
        logits = jnp.dot(h.astype(w2_ref.dtype), w2_ref[...],
                         preferred_element_type=jnp.float32) + b2_ref[...]
        # softmax over experts (== torch dim=1 after flatten); padded lanes have
        # bias -1e30 -> exp == 0, so real lanes match the unpadded softmax.
        m = jnp.max(logits, axis=-1, keepdims=True)
        e = jnp.exp(logits - m)
        denom = jnp.sum(e, axis=-1, keepdims=True)
        inv = pl.reciprocal(denom, approx=False)  # exact: rows sum to 1
        o_ref[...] = (e * inv).astype(o_ref.dtype)


def prepare_gating_params(w1, b1, w2, b2, *, weight_dtype=None):
    """One-time weight prep (hoisted out of the forward path).

    w1: [D_in, H], w2: [H, E] (pre-transposed vs torch's [out, in]);
    b1: [H] or [1, H]; b2: [E] or [1, E].
    """
    w1 = jnp.asarray(w1)
    w2 = jnp.asarray(w2)
    if weight_dtype is not None:
        w1 = w1.astype(weight_dtype)
        w2 = w2.astype(weight_dtype)
    D_in, H = w1.shape
    E = w2.shape[-1]

    # Biases participate only in f32 post-matmul math; keep them f32 & 2-D.
    b1 = jnp.asarray(b1).reshape(1, H).astype(jnp.float32)
    b2 = jnp.asarray(b2).reshape(1, E).astype(jnp.float32)

    # Lane-dense output: pad experts to exactly one 128-lane multiple (no more).
    E_pad = max(_round_up(E, 128), 128)
    if E_pad != E:
        w2 = jnp.pad(w2, ((0, 0), (0, E_pad - E)))
        b2 = jnp.pad(b2, ((0, 0), (0, E_pad - E)), constant_values=_NEG_BIG)

    vmem_cap = _vmem_cap_bytes()

    # K-grid guard: if the single-buffered fc1 weight would eat most of the
    # per-core budget, stream it over a K axis instead of keeping it resident.
    w1_bytes = D_in * H * w1.dtype.itemsize
    k_budget = int(vmem_cap * 0.6)
    if w1_bytes > k_budget:
        k_tiles = _cdiv(w1_bytes, k_budget)
        TK = _round_up(_cdiv(D_in, k_tiles), 128)
        D_in_pad = TK * _cdiv(D_in, TK)
        k_tiles = D_in_pad // TK
        if D_in_pad != D_in:
            w1 = jnp.pad(w1, ((0, D_in_pad - D_in), (0, 0)))
    else:
        k_tiles, TK, D_in_pad = 1, D_in, D_in

    return dict(w1=w1, b1=b1, w2=w2, b2=b2,
                D_in=D_in, D_in_pad=D_in_pad, H=H, E=E, E_pad=E_pad,
                TK=TK, k_tiles=k_tiles, vmem_cap=vmem_cap)


def gating_forward(x, params, *, tb=512):
    """softmax(relu(x.reshape(B,-1) @ w1 + b1) @ w2 + b2, axis=1).

    Output dtype follows x.dtype (f32 in -> f32 out, bf16 in -> bf16 out).
    """
    w1, b1, w2, b2 = params["w1"], params["b1"], params["w2"], params["b2"]
    D_in, D_in_pad = params["D_in"], params["D_in_pad"]
    H, E, E_pad = params["H"], params["E"], params["E_pad"]
    TK, k_tiles = params["TK"], params["k_tiles"]

    B = x.shape[0]
    x2d = x.reshape(B, -1)
    assert x2d.shape[1] == D_in, (x2d.shape, D_in)

    # Batch tile aligned to the dtype-native sublane pack (f32:8, bf16:16, i8:32).
    align = {4: 8, 2: 16, 1: 32}.get(x2d.dtype.itemsize, 8)
    TB = min(int(tb), _round_up(B, align))
    TB = _round_up(TB, align)
    if B <= TB and B > align:
        # Single batch step -> split so a v7x megacore gets >=2 grid steps.
        TB = _round_up(_cdiv(B, 2), align)
    B_pad = _round_up(B, TB)

    if (B_pad, D_in_pad) != (B, D_in):
        x2d = jnp.pad(x2d, ((0, B_pad - B), (0, D_in_pad - D_in)))

    grid = (B_pad // TB, k_tiles)
    out_dtype = x2d.dtype

    # VMEM budget: streamed x/out 2x (double-buffered), weights 1x when
    # resident (2x only when K-streamed), plus the f32 hidden accumulator.
    w1_bufs = 1 if k_tiles == 1 else 2
    est = (2 * TB * TK * x2d.dtype.itemsize          # streamed x tiles
           + w1_bufs * TK * H * w1.dtype.itemsize    # W1
           + H * E_pad * w2.dtype.itemsize           # W2 (resident, 1 buf)
           + (H + E_pad) * 4                         # biases (1 buf)
           + 2 * TB * E_pad * out_dtype.itemsize     # streamed out tiles
           + TB * H * 4)                             # f32 hidden accumulator
    vmem_limit = int(min(max(est + (8 << 20), 16 << 20), params["vmem_cap"]))

    cost = pl.CostEstimate(
        flops=2 * B_pad * (D_in_pad * H + H * E_pad),
        transcendentals=B_pad * E_pad,
        bytes_accessed=(x2d.size * x2d.dtype.itemsize
                        + w1.size * w1.dtype.itemsize
                        + w2.size * w2.dtype.itemsize
                        + (H + E_pad) * 4
                        + B_pad * E_pad * out_dtype.itemsize),
    )

    resident = pl.Buffered(1)  # constant-index blocks need only one buffer
    w1_mode = pl.Buffered(1) if k_tiles == 1 else pl.Buffered(2)

    out = pl.pallas_call(
        gating_kernel,
        out_shape=jax.ShapeDtypeStruct((B_pad, E_pad), out_dtype),
        grid_spec=pltpu.PrefetchScalarGridSpec(
            num_scalar_prefetch=0,
            grid=grid,
            in_specs=[
                pl.BlockSpec((TB, TK), lambda i, k: (i, k)),        # stream x
                pl.BlockSpec((TK, H), lambda i, k: (k, 0),
                             pipeline_mode=w1_mode),                # W1
                pl.BlockSpec((1, H), lambda i, k: (0, 0),
                             pipeline_mode=resident),               # b1
                pl.BlockSpec((H, E_pad), lambda i, k: (0, 0),
                             pipeline_mode=resident),               # W2
                pl.BlockSpec((1, E_pad), lambda i, k: (0, 0),
                             pipeline_mode=resident),               # b2
            ],
            out_specs=pl.BlockSpec((TB, E_pad), lambda i, k: (i, 0)),
            scratch_shapes=[pltpu.VMEM((TB, H), jnp.float32)],
        ),
        compiler_params=pltpu.CompilerParams(
            dimension_semantics=("parallel", "arbitrary"),
            vmem_limit_bytes=vmem_limit,
        ),
        cost_estimate=cost,
    )(x2d, w1, b1, w2, b2)

    return out[:B, :E]


def gating_function(x, w1, b1, w2, b2, *, tb=512):
    """Convenience wrapper: per-call prep + forward (prefer prepare_* once)."""
    return gating_forward(x, prepare_gating_params(w1, b1, w2, b2), tb=tb)


if __name__ == "__main__":
    # Small shapes consistent with the module: image-like [B, C, H, W] input,
    # flattened to [B, C*H*W].  B=13 exercises batch padding; tb=8 exercises a
    # multi-step (parallel) batch grid at this toy size.
    B, C, Hs, Ws = 13, 4, 8, 8
    input_size = C * Hs * Ws            # 256
    hidden_size = 128
    num_experts = 8

    key = jax.random.PRNGKey(0)
    kx, kw1, kb1, kw2, kb2 = jax.random.split(key, 5)

    x = jax.random.normal(kx, (B, C, Hs, Ws), dtype=jnp.float32)
    w1 = 0.05 * jax.random.normal(kw1, (input_size, hidden_size), dtype=jnp.float32)
    b1 = 0.05 * jax.random.normal(kb1, (hidden_size,), dtype=jnp.float32)
    w2 = 0.05 * jax.random.normal(kw2, (hidden_size, num_experts), dtype=jnp.float32)
    b2 = 0.05 * jax.random.normal(kb2, (num_experts,), dtype=jnp.float32)

    xf = x.reshape(B, -1)
    ref = jax.nn.softmax(jnp.maximum(xf @ w1 + b1, 0.0) @ w2 + b2, axis=1)

    # f32 path (one-time prep hoisted out of the forward call).
    params_f32 = prepare_gating_params(w1, b1, w2, b2)
    out = jax.block_until_ready(gating_forward(x, params_f32, tb=8))
    assert out.shape == (B, num_experts)
    assert out.dtype == jnp.float32
    assert jnp.allclose(out, ref, atol=1e-4, rtol=1e-4), \
        float(jnp.max(jnp.abs(out - ref)))
    assert jnp.allclose(jnp.sum(out, axis=1), 1.0, atol=1e-4)

    # bf16 streaming path: bf16 x / weights / output writeback, f32 accumulate
    # and f32 softmax epilogue inside the kernel.
    params_bf16 = prepare_gating_params(w1, b1, w2, b2, weight_dtype=jnp.bfloat16)
    out_bf16 = jax.block_until_ready(
        gating_forward(x.astype(jnp.bfloat16), params_bf16, tb=8))
    assert out_bf16.shape == (B, num_experts)
    assert out_bf16.dtype == jnp.bfloat16
    assert jnp.allclose(out_bf16.astype(jnp.float32), ref, atol=5e-2)
    assert jnp.allclose(jnp.sum(out_bf16.astype(jnp.float32), axis=1), 1.0,
                        atol=2e-2)

    print("KERNEL_OK")
</pallas_src>

<mosaic_0001>
module attributes {stable_mosaic.version = 11 : i64} {
  func.func @gating_kernel(%arg0: i32, %arg1: i32, %arg2: memref<8x256xf32, #tpu.memory_space<vmem>>, %arg3: memref<256x128xf32, #tpu.memory_space<vmem>>, %arg4: memref<1x128xf32, #tpu.memory_space<vmem>>, %arg5: memref<128x128xf32, #tpu.memory_space<vmem>>, %arg6: memref<1x128xf32, #tpu.memory_space<vmem>>, %arg7: memref<8x128xf32, #tpu.memory_space<vmem>>, %arg8: memref<8x128xf32, #tpu.memory_space<vmem>>) attributes {dimension_semantics = [#tpu.dimension_semantics<parallel>, #tpu.dimension_semantics<arbitrary>], iteration_bounds = array<i64: 2, 1>, scalar_prefetch = 0 : i64, scratch_operands = 1 : i64, tpu.core_type = #tpu.core_type<tc>, window_params = [{transform_indices = @transform_0, window_bounds = array<i64: 8, 256>}, {pipeline_mode = #tpu.pipeline_mode<synchronous>, transform_indices = @transform_1, window_bounds = array<i64: 256, 128>}, {pipeline_mode = #tpu.pipeline_mode<synchronous>, transform_indices = @transform_2, window_bounds = array<i64: 1, 128>}, {pipeline_mode = #tpu.pipeline_mode<synchronous>, transform_indices = @transform_3, window_bounds = array<i64: 128, 128>}, {pipeline_mode = #tpu.pipeline_mode<synchronous>, transform_indices = @transform_4, window_bounds = array<i64: 1, 128>}, {transform_indices = @transform_5, window_bounds = array<i64: 8, 128>}]} {
    %c0_i32 = arith.constant 0 : i32
    %0 = arith.cmpi eq, %arg1, %c0_i32 : i32
    %1 = arith.extui %0 : i1 to i32
    %c0_i32_0 = arith.constant 0 : i32
    %2 = arith.cmpi ne, %1, %c0_i32_0 : i32
    scf.if %2 {
      %cst_10 = arith.constant 0.000000e+00 : f32
      %12 = vector.broadcast %cst_10 : f32 to vector<8x128xf32>
      %c0_11 = arith.constant 0 : index
      %c0_12 = arith.constant 0 : index
      %13 = vector.load %arg8[%c0_11, %c0_12] : memref<8x128xf32, #tpu.memory_space<vmem>>, vector<8x128xf32>
      tpu.vector_store %arg8[%c0_11, %c0_12], %12 {strides = array<i32>} : memref<8x128xf32, #tpu.memory_space<vmem>>, vector<8x128xf32>,
    } else {
    }
    %c0 = arith.constant 0 : index
    %c0_1 = arith.constant 0 : index
    %3 = vector.load %arg8[%c0, %c0_1] : memref<8x128xf32, #tpu.memory_space<vmem>>, vector<8x128xf32>
    %c0_2 = arith.constant 0 : index
    %c0_3 = arith.constant 0 : index
    %4 = vector.load %arg2[%c0_2, %c0_3] : memref<8x256xf32, #tpu.memory_space<vmem>>, vector<8x256xf32>
    %c0_4 = arith.constant 0 : index
    %c0_5 = arith.constant 0 : index
    %5 = vector.load %arg3[%c0_4, %c0_5] : memref<256x128xf32, #tpu.memory_space<vmem>>, vector<256x128xf32>
    %cst = arith.constant dense<0.000000e+00> : vector<8x128xf32>
    %6 = tpu.matmul %4, %5, %cst {dimension_numbers = #tpu.dot_dimension_numbers<[1], [0], [0], [1], [0, 0, 1, 1], [], []>} : vector<8x256xf32>, vector<256x128xf32>, vector<8x128xf32> -> vector<8x128xf32>
    %7 = arith.addf %3, %6 : vector<8x128xf32>
    %c0_6 = arith.constant 0 : index
    %c0_7 = arith.constant 0 : index
    %8 = vector.load %arg8[%c0_6, %c0_7] : memref<8x128xf32, #tpu.memory_space<vmem>>, vector<8x128xf32>
    tpu.vector_store %arg8[%c0_6, %c0_7], %7 {strides = array<i32>} : memref<8x128xf32, #tpu.memory_space<vmem>>, vector<8x128xf32>,
    %c0_i32_8 = arith.constant 0 : i32
    %9 = arith.cmpi eq, %arg1, %c0_i32_8 : i32
    %10 = arith.extui %9 : i1 to i32
    %c0_i32_9 = arith.constant 0 : i32
    %11 = arith.cmpi ne, %10, %c0_i32_9 : i32
    scf.if %11 {
      %c0_10 = arith.constant 0 : index
      %c0_11 = arith.constant 0 : index
      %12 = vector.load %arg8[%c0_10, %c0_11] : memref<8x128xf32, #tpu.memory_space<vmem>>, vector<8x128xf32>
      %c0_12 = arith.constant 0 : index
      %c0_13 = arith.constant 0 : index
      %13 = vector.load %arg4[%c0_12, %c0_13] : memref<1x128xf32, #tpu.memory_space<vmem>>, vector<1x128xf32>
      %14 = vector.broadcast %13 : vector<1x128xf32> to vector<8x128xf32>
      %15 = arith.addf %12, %14 : vector<8x128xf32>
      %cst_14 = arith.constant 0.000000e+00 : f32
      %16 = vector.broadcast %cst_14 : f32 to vector<8x128xf32>
      %17 = arith.maximumf %15, %16 : vector<8x128xf32>
      %c0_15 = arith.constant 0 : index
      %c0_16 = arith.constant 0 : index
      %18 = vector.load %arg5[%c0_15, %c0_16] : memref<128x128xf32, #tpu.memory_space<vmem>>, vector<128x128xf32>
      %cst_17 = arith.constant dense<0.000000e+00> : vector<8x128xf32>
      %19 = tpu.matmul %17, %18, %cst_17 {dimension_numbers = #tpu.dot_dimension_numbers<[1], [0], [0], [1], [0, 0, 1, 1], [], []>} : vector<8x128xf32>, vector<128x128xf32>, vector<8x128xf32> -> vector<8x128xf32>
      %c0_18 = arith.constant 0 : index
      %c0_19 = arith.constant 0 : index
      %20 = vector.load %arg6[%c0_18, %c0_19] : memref<1x128xf32, #tpu.memory_space<vmem>>, vector<1x128xf32>
      %21 = vector.broadcast %20 : vector<1x128xf32> to vector<8x128xf32>
      %22 = arith.addf %19, %21 : vector<8x128xf32>
      %cst_20 = arith.constant dense<0xFF800000> : vector<8xf32>
      %23 = vector.multi_reduction <maximumf>, %22, %cst_20 [1] : vector<8x128xf32> to vector<8xf32>
      %24 = vector.shape_cast %23 : vector<8xf32> to vector<8x1xf32>
      %25 = vector.broadcast %24 : vector<8x1xf32> to vector<8x128xf32>
      %26 = arith.subf %22, %25 : vector<8x128xf32>
      %27 = math.exp %26 : vector<8x128xf32>
      %cst_21 = arith.constant dense<0.000000e+00> : vector<8xf32>
      %28 = vector.multi_reduction <add>, %27, %cst_21 [1] : vector<8x128xf32> to vector<8xf32>
      %29 = vector.shape_cast %28 : vector<8xf32> to vector<8x1xf32>
      %30 = tpu.reciprocal %29 : vector<8x1xf32> -> vector<8x1xf32>
      %31 = vector.broadcast %30 : vector<8x1xf32> to vector<8x128xf32>
      %32 = arith.mulf %27, %31 : vector<8x128xf32>
      %c0_22 = arith.constant 0 : index
      %c0_23 = arith.constant 0 : index
      %33 = vector.load %arg7[%c0_22, %c0_23] : memref<8x128xf32, #tpu.memory_space<vmem>>, vector<8x128xf32>
      tpu.vector_store %arg7[%c0_22, %c0_23], %32 {strides = array<i32>} : memref<8x128xf32, #tpu.memory_space<vmem>>, vector<8x128xf32>,
    } else {
    }
    return
  }
  func.func @transform_0(%arg0: i32, %arg1: i32) -> (i32, i32) {
    %c0_i32 = arith.constant 0 : i32
    return %arg0, %arg1 : i32, i32
  }
  func.func @transform_1(%arg0: i32, %arg1: i32) -> (i32, i32) {
    %c0_i32 = arith.constant 0 : i32
    %c0_i32_0 = arith.constant 0 : i32
    return %arg1, %c0_i32 : i32, i32
  }
  func.func @transform_2(%arg0: i32, %arg1: i32) -> (i32, i32) {
    %c0_i32 = arith.constant 0 : i32
    %c0_i32_0 = arith.constant 0 : i32
    %c0_i32_1 = arith.constant 0 : i32
    return %c0_i32, %c0_i32_0 : i32, i32
  }
  func.func @transform_3(%arg0: i32, %arg1: i32) -> (i32, i32) {
    %c0_i32 = arith.constant 0 : i32
    %c0_i32_0 = arith.constant 0 : i32
    %c0_i32_1 = arith.constant 0 : i32
    return %c0_i32, %c0_i32_0 : i32, i32
  }
  func.func @transform_4(%arg0: i32, %arg1: i32) -> (i32, i32) {
    %c0_i32 = arith.constant 0 : i32
    %c0_i32_0 = arith.constant 0 : i32
    %c0_i32_1 = arith.constant 0 : i32
    return %c0_i32, %c0_i32_0 : i32, i32
  }
  func.func @transform_5(%arg0: i32, %arg1: i32) -> (i32, i32) {
    %c0_i32 = arith.constant 0 : i32
    %c0_i32_0 = arith.constant 0 : i32
    return %arg0, %c0_i32 : i32, i32
  }
}

</mosaic_0001>

<bundles_post_ra>
// kernel: tpu_custom_call.1
= control target key start
LH: loop header
LB: loop body
LE: loop exit
PB: predicated region body
PF: predicated region fallthrough
CT: control target
= control target key end

     0   :  { %10 = vsyncpa [#allocation4], 0  ;;  %s1378_s0 = inlined_call_operand.hbm [shape: f32[16,256], index: 0, kind: input, shape index: {}]   ;;  %s1379_s1 = inlined_call_operand.hbm [shape: f32[256,128], index: 1, kind: input, shape index: {}]   ;;  %s1380_s2 = inlined_call_operand.vmem [shape: f32[1,128], index: 2, kind: input, shape index: {}]   ;;  %s1381_s3 = inlined_call_operand.hbm [shape: f32[128,128], index: 3, kind: input, shape index: {}]   ;;  %s1382_s4 = inlined_call_operand.vmem [shape: f32[1,128], index: 4, kind: input, shape index: {}]   ;;  %s1383_s5 = inlined_call_operand.hbm [shape: f32[16,128], index: 5, kind: output, shape index: {}]  }
   0x1   :  { %12 = vsyncpa [#allocation4 + $0x1], 0 }
   0x2   :  { %13 = vsyncpa [#allocation7], 0 }
   0x3   :  { %14 = vsyncpa [#allocation5], 0 }
   0x4   :  { %16 = vsyncpa [#allocation5 + $0x1], 0  ;;  %s1109_s18 = smov 0   ;;  %s1111_s19 = smov 0  }
   0x5   :  { %s1113_s20 = smov 0   ;;  %s1115_s21 = smov 0  }
   0x6   :  { %s1117_s22 = smov 0   ;;  %s1119_s23 = smov 0  }
   0x7 LB: > { %s640_s24 = sadd.s32 4294967295, %s1068_s23   ;;  %s641_s25 = sadd.s32 4294967294, %s1068_s23   ;;  %s1068_s23 = sphi %s1119_s23, %s22_s23   ;;  %s1064_s22 = sphi %s1117_s22, %s1405_s22   ;;  %s1060_s21 = sphi %s1115_s21, %s1404_s21   ;;  %s1056_s20 = sphi %s1113_s20, %s1403_s20   ;;  %s1052_s19 = sphi %s1111_s19, %s1402_s19   ;;  %s1048_s18 = sphi %s1109_s18, %s1401_s18  }
   0x8   : > { %p56_p0 = scmp.ne.s32.totalorder %s1052_s19, %s1048_s18  ;;  %p1143_p1 = scmp.eq.s32.totalorder %s640_s24, 0 }
   0x9   : > { %p1147_p2 = scmp.eq.s32.totalorder %s640_s24, 1  ;;  %p175_p3 = scmp.eq.s32.totalorder %s641_s25, 1 }
   0xa   : > { %s1388_s26 = scalar_select %p1143_p1, 1, 0 }
   0xb   : > { %p1153_p4 = por %p1143_p1, %p56_p0  ;;  %p642_p5 = scmp.ge.s32.totalorder %s1068_s23, 1 }
   0xc   : > { %p1158_p6 = por %p175_p3, %p56_p0  ;;  %p182_p7 = scmp.lt.s32.totalorder %s1068_s23, 3 }
   0xd   : > { %s1390_s28 = scalar_select %p1153_p4, 1, 0 }
   0xe   : > { %s1391_s29 = scalar_select %p1158_p6, 1, 0 }
   0xf   : > { %p1163_p8 = pnand %p642_p5, %p182_p7  ;;  %s1070_s6 = smov [#allocation6]  }
  0x10   : > { %s197_s7 = sshll.u32 %s1070_s6, 4  ;;  %s1071_s9 = smov [#allocation8]   ;;  %s1167_s7 = int_to_ptr.vmem [resolvable:$true] %s197_s7 }
  0x11   : > { %p816_p9 = pneg %p1163_p8  ;;  %s213_s10 = sshll.u32 %s1071_s9, 4  ;;  %s1178_s10 = int_to_ptr.vmem [resolvable:$true] %s213_s10 }
  0x12   : > { %s896_s13 = scalar_lea.hbm %s1379_s1, 4096 }
  0x13   : > { %p1174_p11 = pnand %p816_p9, %p1143_p1  ;;  %p897_p12 = scmp.ne.s32.totalorder %s1379_s1, %s896_s13 }
  0x14   : > { %p903_p5 = scmp.lt.u32.totalorder %s896_s13, %s1379_s1 }
  0x15   : > { %p898_p13 = pneg %p1174_p11 }
  0x17   : > { %p899_p0 = pnand %p898_p13, %p897_p12 }
  0x19   : > { %p900_p3 = pneg %p899_p0 }
  0x1b   : > { %p905_p7 = pnand %p903_p5, %p900_p3 }
  0x1d   : > { %908 = shalt.err (!%p905_p7)
}
  0x1e   : > { %s909_s24 = scalar_lea.vmem %s1167_s7, 4096  ;;  %p917_p1 = scmp.lt.s32.totalorder %s1167_s7, %s1167_s7 }
  0x1f   : > { %p910_p9 = scmp.ne.s32.totalorder %s1167_s7, %s909_s24  ;;  %p918_p12 = scmp.lt.s32.totalorder %s909_s24, %s909_s24 }
  0x21   : > { %p912_p10 = pnand %p910_p9, %p898_p13  ;;  %p919_p0 = por %p918_p12, %p917_p1 }
  0x23   : > { %p913_p6 = pneg %p912_p10 }
  0x25   : > { %p920_p4 = pnand %p919_p0, %p913_p6 }
  0x27   : > { %923 = shalt.err (!%p920_p4)
}
  0x28   : > { %s1072_s25 = smov 128   ;;  %s1073_s6 = smov 8  }
  0x29   : > { %819 = dma.hbm_to_vmem [thread:$0]  (!%p1174_p11), %s1379_s1, 4096, %s1167_s7, [#allocation7], %s1072_s25, %s1072_s25, %s1073_s6  }
  0x2a   : > { %s924_s14 = scalar_lea.hbm %s1381_s3, 2048 }
  0x2b   : > { %p925_p1 = scmp.ne.s32.totalorder %s1381_s3, %s924_s14  ;;  %p931_p10 = scmp.lt.u32.totalorder %s924_s14, %s1381_s3 }
  0x2d   : > { %p927_p4 = pnand %p925_p1, %p898_p13 }
  0x2f   : > { %p928_p6 = pneg %p927_p4 }
  0x31   : > { %p933_p3 = pnand %p931_p10, %p928_p6 }
  0x33   : > { %936 = shalt.err (!%p933_p3)
}
  0x34   : > { %s937_s7 = scalar_lea.vmem %s1178_s10, 2048  ;;  %p945_p12 = scmp.lt.s32.totalorder %s1178_s10, %s1178_s10 }
  0x35   : > { %p938_p5 = scmp.ne.s32.totalorder %s1178_s10, %s937_s7  ;;  %p946_p0 = scmp.lt.s32.totalorder %s937_s7, %s937_s7 }
  0x37   : > { %p940_p7 = pnand %p938_p5, %p898_p13  ;;  %p947_p1 = por %p946_p0, %p945_p12 }
  0x39   : > { %p941_p9 = pneg %p940_p7 }
  0x3b   : > { %p948_p4 = pnand %p947_p1, %p941_p9 }
  0x3d   : > { %951 = shalt.err (!%p948_p4)
}
  0x3e   : > { %822 = dma.hbm_to_vmem [thread:$0]  (!%p1174_p11), %s1381_s3, 2048, %s1178_s10, [#allocation7], %s1072_s25, %s1072_s25, %s1073_s6  }
  0x3f   : > { %s34_s12 = sadd.s32 1, %s1064_s22  ;;  %s43_s13 = sadd.s32 1, %s1056_s20 }
  0x40   : > { %p36_p13 = scmp.ge.s32.totalorder %s34_s12, 2  ;;  %p50_p6 = scmp.ne.s32.totalorder %s1056_s20, %s1052_s19 }
  0x41   : > { %p51_p10 = scmp.eq.s32.totalorder %s1068_s23, 0  ;;  %p833_p3 = scmp.lt.s32.totalorder %s1068_s23, 2 }
  0x42   : > { %s1407_s12 = smov (%p36_p13, %s34_s12), 0  ;;  %p1242_p7 = por %p1147_p2, %p50_p6 }
  0x43   : > { %p52_p5 = por %p51_p10, %p50_p6  ;;  %s38_s14 = ssub.s32 %s1064_s22, %s1407_s12 }
  0x44   : > { %s1394_s8 = scalar_select %p1242_p7, 1, 0 }
  0x45   : > { %s230_s15 = sand.u32 1, %s1056_s20   ;;  %p41_p9 = scmp.eq.s32.totalorder %s38_s14, 0 }
  0x46   : > { %s646_s10 = sshll.u32 %s230_s15, 4  ;;  %s660_s25 = sshll.u32 %s1064_s22, 8 }
  0x47   : > { %s1251_s6 = scalar_select %p41_p9, %s1056_s20, %s43_s13  }
  0x48   : > { %s1256_s24 = scalar_lea.hbm %s1378_s0, %s660_s25  ;;  %s234_s27 = scalar_lea.vmem [#allocation3], %s646_s10 }
  0x49   : > { %s244_s7 = sshll.u32 %s234_s27, 4  ;;  %p1260_p2 = pnand %p833_p3, %p52_p5  ;;  %s1264_s7 = int_to_ptr.vmem [resolvable:$true] %s244_s7 }
  0x4a   : > { %s231_s11 = scalar_lea.sflag [#allocation4], %s230_s15  ;;  %s952_s13 = scalar_lea.hbm %s1256_s24, 256 }
  0x4b   : > { %p953_p11 = scmp.ne.s32.totalorder %s1256_s24, %s952_s13  ;;  %p954_p12 = pneg %p1260_p2 }
  0x4c   : > { %s957_s25 = scalar_lea.hbm %s1378_s0, 512  ;;  %p958_p4 = scmp.lt.u32.totalorder %s1256_s24, %s1378_s0 }
  0x4d   : > { %p955_p0 = pnand %p954_p12, %p953_p11  ;;  %p959_p13 = scmp.lt.u32.totalorder %s957_s25, %s952_s13 }
  0x4e   : > { %p961_p10 = scmp.lt.u32.totalorder %s952_s13, %s1256_s24 }
  0x4f   : > { %p956_p1 = pneg %p955_p0  ;;  %p960_p6 = por %p959_p13, %p958_p4 }
  0x51   : > { %p962_p3 = por %p961_p10, %p960_p6 }
  0x53   : > { %p963_p5 = pnand %p962_p3, %p956_p1 }
  0x55   : > { %966 = shalt.err (!%p963_p5)
}
  0x56   : > { %s967_s15 = scalar_lea.vmem %s1264_s7, 256  ;;  %s1074_s27 = smov [#allocation3]  }
  0x57   : > { %p968_p9 = scmp.ne.s32.totalorder %s1264_s7, %s967_s15  ;;  %s972_s14 = sshll.u32 %s1074_s27, 4  ;;  %s973_s14 = int_to_ptr.vmem [resolvable:$false] %s972_s14 }
  0x58   : > { %s974_s10 = scalar_lea.vmem %s973_s14, 512  ;;  %p975_p7 = scmp.lt.s32.totalorder %s1264_s7, %s973_s14 }
  0x59   : > { %p970_p11 = pnand %p968_p9, %p954_p12  ;;  %p976_p4 = scmp.lt.s32.totalorder %s974_s10, %s967_s15 }
  0x5b   : > { %p971_p0 = pneg %p970_p11  ;;  %p977_p13 = por %p976_p4, %p975_p7 }
  0x5d   : > { %p978_p6 = pnand %p977_p13, %p971_p0 }
  0x5f   : > { %981 = shalt.err (!%p978_p6)
}
  0x60   : > { %826 = dma.hbm_to_vmem [thread:$0]  (!%p1260_p2), %s1256_s24, 256, %s1264_s7, %s231_s11  }
  0x61   : > { %253 = sbr.rel (%p1163_p8) target bundleno = 902 (0x386), region = 40  ;;  %s1294_s13 = sand.u32 (!%p1163_p8), 1, %s1052_s19  }
  0x62   : > { %s650_s25 = sshll.u32 (!%p1163_p8), %s1294_s13, 4  ;;  %s256_s16 = scalar_lea.sflag (!%p1163_p8), [#allocation4], %s1294_s13 }
  0x63   : > { %s1298_s17 = scalar_lea.vmem (!%p1163_p8), [#allocation3], %s650_s25  ;;  %p1396_p7 = scmp.ne.s32.totalorder (!%p1163_p8), %s1390_s28, 0 }
  0x68   : > { %1035 = dma.done.wait (%p1396_p7), %s256_s16, 256  }
  0x69   : > { %1037 = vsyncadd (%p1396_p7), %s256_s16, 4294967040  ;;  %p1397_p2 = scmp.ne.s32.totalorder %s1388_s26, 0 }
  0x6b   : > { %1039 = dma.done.wait (%p1397_p2), [#allocation7], 6144  }
  0x6c   : > { %1041 = vsyncadd (%p1397_p2), [#allocation7], 4294961152  ;;  %v1075_v0 = vmov 0.0|0.0   ;;  %v320_v1 = vld [vmem:[#allocation6 + $0x80] sm:$0xff]  ;;  %v321_v2 = vld [vmem:[#allocation6 + $0x88] sm:$0xff]  ;;  %vm1076_vm0 = vmmov 0  }
  0x6d   : > { %780 = vmatprep.subr.bf16.mxu1 %v1075_v0  ;;  %v304_v3 = vld [vmem:[#allocation6] sm:$0xff]  ;;  %v748_v4 = vpack.c.bf16 %v321_v2, %v320_v1  ;;  %v305_v5 = vld [vmem:[#allocation6 + $0x8] sm:$0xff]  ;;  %v322_v6 = vld [vmem:[#allocation6 + $0x90] sm:$0xff]  ;;  %s653_s7 = sshll.u32 %s1294_s13, 3  ;;  %s657_s9 = sshll.u32 %s1060_s21, 7 }
  0x6e   : > { %v323_v7 = vld [vmem:[#allocation6 + $0x98] sm:$0xff]  ;;  %v750_v8 = vpack.c.bf16 %v305_v5, %v304_v3  ;;  %v306_v10 = vld [vmem:[#allocation6 + $0x10] sm:$0xff]  ;;  %v324_v12 = vld [vmem:[#allocation6 + $0xa0] sm:$0xff]  ;;  %s293_s11 = scalar_lea.vmem [#allocation9], %s653_s7  ;;  %s1329_s10 = scalar_lea.hbm %s1383_s5, %s657_s9 }
  0x6f   : > { %v752_v9 = vpack.c.bf16 %v323_v7, %v322_v6  ;;  %v307_v11 = vld [vmem:[#allocation6 + $0x18] sm:$0xff]  ;;  %749 = vmatprep.subr.bf16.mxu0 %v748_v4  ;;  %v325_v13 = vld [vmem:[#allocation6 + $0xa8] sm:$0xff]  ;;  %v308_v16 = vld [vmem:[#allocation6 + $0x20] sm:$0xff]  ;;  %s538_s15 = sshll.u32 %s293_s11, 4  ;;  %s525_s25 = scalar_lea.sflag [#allocation5], %s1294_s13  ;;  %s1331_s15 = int_to_ptr.vmem [resolvable:$true] %s538_s15 }
  0x70   : > { %751 = vmatpush3.bf16.msra.mxu0 %v750_v8  ;;  %v754_v14 = vpack.c.bf16 %v307_v11, %v306_v10  ;;  %v756_v15 = vpack.c.bf16 %v325_v13, %v324_v12  ;;  %v309_v17 = vld [vmem:[#allocation6 + $0x28] sm:$0xff]  ;;  %v326_v18 = vld [vmem:[#allocation6 + $0xb0] sm:$0xff]  ;;  %v327_v19 = vld [vmem:[#allocation6 + $0xb8] sm:$0xff]  ;;  %v1077_v12 = vmov 0.0   ;;  %s982_s16 = scalar_lea.vmem %s1331_s15, 128  ;;  %p1398_p12 = scmp.ne.s32.totalorder %s1394_s8, 0 }
  0x71   : > { %753 = vmatprep.subr.bf16.mxu0 %v752_v9  ;;  %v758_v20 = vpack.c.bf16 %v309_v17, %v308_v16  ;;  %v760_v21 = vpack.c.bf16 %v327_v19, %v326_v18  ;;  %v310_v22 = vld [vmem:[#allocation6 + $0x30] sm:$0xff]  ;;  %v311_v23 = vld [vmem:[#allocation6 + $0x38] sm:$0xff]  ;;  %v328_v24 = vld [vmem:[#allocation6 + $0xc0] sm:$0xff]  ;;  %745 = vmatprep.mubr.msk.f32.mxu1 %vm1076_vm0, %v1077_v12  ;;  %p983_p8 = scmp.ne.s32.totalorder %s1331_s15, %s982_s16  ;;  %s1078_s21 = smov [#allocation9]  }
  0x72   : > { %v329_v25 = vld [vmem:[#allocation6 + $0xc8] sm:$0xff]  ;;  %v421_v27 = vld [vmem:[#allocation8] sm:$0xff]  ;;  %v762_v29 = vpack.c.bf16 %v311_v23, %v310_v22  ;;  %v423_v31 = vld [vmem:[#allocation8 + $0x10] sm:$0xff] }
  0x73   : > { %v303_v26 = vld [vmem:[%s1298_s17 + $0x8] sm:$0xff]  ;;  %v764_v33 = vpack.c.bf16 %v329_v25, %v328_v24  ;;  %v312_v34 = vld [vmem:[#allocation6 + $0x40] sm:$0xff]  ;;  %v330_v36 = vld [vmem:[#allocation6 + $0xd0] sm:$0xff]  ;;  %p984_p1 = pnand %p983_p8, %p1398_p12 }
  0x74   : > { %755 = vmatpush3.bf16.msra.mxu0 %v754_v14  ;;  %400 = vmatprep.mubr.f32.mxu0 %v303_v26  ;;  %v422_v28 = vld [vmem:[#allocation8 + $0x8] sm:$0xff]  ;;  %v424_v32 = vld [vmem:[#allocation8 + $0x18] sm:$0xff]  ;;  %v425_v39 = vld [vmem:[#allocation8 + $0x20] sm:$0xff] }
  0x75   : > { %757 = vmatprep.subr.bf16.mxu0 %v756_v15  ;;  %v781_v30 = vpack.c.bf16 %v422_v28, %v421_v27  ;;  %v313_v35 = vld [vmem:[#allocation6 + $0x48] sm:$0xff]  ;;  %v331_v37 = vld [vmem:[#allocation6 + $0xd8] sm:$0xff]  ;;  %v784_v38 = vpack.c.bf16 %v424_v32, %v423_v31  ;;  %v314_v43 = vld [vmem:[#allocation6 + $0x50] sm:$0xff]  ;;  %p985_p10 = pneg %p984_p1 }
  0x76   : > { %v426_v40 = vld [vmem:[#allocation8 + $0x28] sm:$0xff]  ;;  %v766_v41 = vpack.c.bf16 %v313_v35, %v312_v34  ;;  %v768_v42 = vpack.c.bf16 %v331_v37, %v330_v36  ;;  %v315_v44 = vld [vmem:[#allocation6 + $0x58] sm:$0xff]  ;;  %v332_v45 = vld [vmem:[#allocation6 + $0xe0] sm:$0xff] }
  0x77   : > { %782 = vmatpush3.bf16.msra.mxu1 %v781_v30  ;;  %v333_v46 = vld [vmem:[#allocation6 + $0xe8] sm:$0xff]  ;;  %v787_v47 = vpack.c.bf16 %v426_v40, %v425_v39  ;;  %v427_v48 = vld [vmem:[#allocation8 + $0x30] sm:$0xff]  ;;  %v428_v49 = vld [vmem:[#allocation8 + $0x38] sm:$0xff]  ;;  %v770_v50 = vpack.c.bf16 %v315_v44, %v314_v43 }
  0x78   : > { %759 = vmatpush3.bf16.msra.mxu0 %v758_v20  ;;  %783 = vmatprep.subr.bf16.mxu1 %v1075_v0  ;;  %v772_v51 = vpack.c.bf16 %v333_v46, %v332_v45  ;;  %v316_v52 = vld [vmem:[#allocation6 + $0x60] sm:$0xff]  ;;  %v317_v53 = vld [vmem:[#allocation6 + $0x68] sm:$0xff]  ;;  %v334_v54 = vld [vmem:[#allocation6 + $0xf0] sm:$0xff]  ;;  %v790_v56 = vpack.c.bf16 %v428_v49, %v427_v48 }
  0x79   : > { %761 = vmatprep.subr.bf16.mxu0 %v760_v21  ;;  %v335_v55 = vld [vmem:[#allocation6 + $0xf8] sm:$0xff]  ;;  %v429_v57 = vld [vmem:[#allocation8 + $0x40] sm:$0xff]  ;;  %v430_v58 = vld [vmem:[#allocation8 + $0x48] sm:$0xff]  ;;  %v774_v59 = vpack.c.bf16 %v317_v53, %v316_v52 }
  0x7a   : > { %v776_v60 = vpack.c.bf16 %v335_v55, %v334_v54  ;;  %v318_v61 = vld [vmem:[#allocation6 + $0x70] sm:$0xff]  ;;  %v319_v62 = vld [vmem:[#allocation6 + $0x78] sm:$0xff]  ;;  %v793_v63 = vpack.c.bf16 %v430_v58, %v429_v57  ;;  %v433_v6 = vld [vmem:[#allocation8 + $0x60] sm:$0xff] }
  0x7b   : > { %785 = vmatpush3.bf16.msra.mxu1 %v784_v38  ;;  %v431_v1 = vld [vmem:[#allocation8 + $0x50] sm:$0xff]  ;;  %v432_v2 = vld [vmem:[#allocation8 + $0x58] sm:$0xff]  ;;  %v778_v3 = vpack.c.bf16 %v319_v62, %v318_v61  ;;  %v434_v7 = vld [vmem:[#allocation8 + $0x68] sm:$0xff] }
  0x7c   : > { %763 = vmatpush3.bf16.msra.mxu0 %v762_v29  ;;  %786 = vmatprep.subr.bf16.mxu1 %v1075_v0  ;;  %v796_v4 = vpack.c.bf16 %v432_v2, %v431_v1  ;;  %v302_v5 = vld [vmem:[%s1298_s17] sm:$0xff]  ;;  %v799_v8 = vpack.c.bf16 %v434_v7, %v433_v6  ;;  %v436_v10 = vld [vmem:[#allocation8 + $0x78] sm:$0xff]  ;;  %s986_s17 = sshll.u32 %s1078_s21, 4  ;;  %s987_s17 = int_to_ptr.vmem [resolvable:$false] %s986_s17 }
  0x7d   : > { %765 = vmatprep.subr.bf16.mxu0 %v764_v33  ;;  %v435_v9 = vld [vmem:[#allocation8 + $0x70] sm:$0xff]  ;;  %v654_v15 = vld [vmem:[%s1380_s2] ss:$0 sm:$0xff]  ;;  %s988_s26 = scalar_lea.vmem %s987_s17, 256  ;;  %p989_p3 = scmp.lt.s32.totalorder %s1331_s15, %s987_s17 }
  0x7e   : > { %v802_v11 = vpack.c.bf16 %v436_v10, %v435_v9  ;;  %p990_p5 = scmp.lt.s32.totalorder %s988_s26, %s982_s16 }
  0x7f   : > { %788 = vmatpush3.bf16.msra.mxu1 %v787_v47 }
  0x80   : > { %767 = vmatpush3.bf16.msra.mxu0 %v766_v41  ;;  %789 = vmatprep.subr.bf16.mxu1 %v1075_v0  ;;  %p991_p9 = por %p990_p5, %p989_p3 }
  0x81   : > { %769 = vmatprep.subr.bf16.mxu0 %v768_v42 }
  0x82   : > { %p992_p11 = pnand %p991_p9, %p985_p10 }
  0x83   : > { %791 = vmatpush3.bf16.msra.mxu1 %v790_v56 }
  0x84   : > { %771 = vmatpush3.bf16.msra.mxu0 %v770_v50  ;;  %792 = vmatprep.subr.bf16.mxu1 %v1075_v0 }
  0x85   : > { %773 = vmatprep.subr.bf16.mxu0 %v772_v51 }
  0x87   : > { %794 = vmatpush3.bf16.msra.mxu1 %v793_v63 }
  0x88   : > { %775 = vmatpush3.bf16.msra.mxu0 %v774_v59  ;;  %795 = vmatprep.subr.bf16.mxu1 %v1075_v0 }
  0x89   : > { %777 = vmatprep.subr.bf16.mxu0 %v776_v60 }
  0x8b   : > { %797 = vmatpush3.bf16.msra.mxu1 %v796_v4 }
  0x8c   : > { %779 = vmatpush3.bf16.msra.mxu0 %v778_v3  ;;  %798 = vmatprep.subr.bf16.mxu1 %v1075_v0 }
  0x8f   : > { %401 = vmatmul.mubr.f32.vlgmr.msra.gmra.mrb[0].mxu0 %v302_v5  ;;  %800 = vmatpush3.bf16.msra.mxu1 %v799_v8 }
  0x90   : > { %801 = vmatprep.subr.bf16.mxu1 %v1075_v0  ;;  %v655_v0 = vld [vmem:[%s1382_s4] ss:$0 sm:$0xff] }
  0x93   : > { %803 = vmatpush3.bf16.msra.mxu1 %v802_v11 }
 0x162   : > { %v693_v13 = vpop.f32.mrb[0].mxu0 }
 0x163   : > { %v694_v14 = vpop.f32.mrb[1].mxu0 }
 0x164   : > { %v695_v16 = vadd.f32 %v694_v14, %v693_v13 }
 0x166   : > { %v419_v17 = vadd.f32 %v695_v16, %v654_v15 }
 0x168   : > { %v420_v18 = vmax.f32 %v419_v17, 0.0 }
 0x16a   : > { %746 = vmatmul.mubr.f32.vlgmr.msra.gmra.mrb[0].mxu1 %v420_v18 }
 0x23d   : > { %v510_v19 = vpop.f32.mrb[0].mxu1 }
 0x23e   : > { %v511_v20 = vadd.f32 %v655_v0, %v510_v19  ;;  %v747_v21 = vpop.f32.mrb[1].mxu1 }
 0x240   : > { %514 = vmax.xlane.f32.xlu0 %v511_v20 }
 0x2cd   : > { %v515_v22 = vpop.xlane.xlu0 %514 }
 0x2ce   : > { %v516_v23 = vsub.f32 %v511_v20, %v515_v22 }
 0x2d0   : > { %v517_v24 = vmul.f32 1.442695, %v516_v23 }
 0x2d2   : > { %892 = vpow2.f32 %v517_v24 }
 0x2dc   : > { %v893_v25 = vpop.eup %892 }
 0x2dd   : > { %519 = vadd.xlane.f32.xlu0 %v893_v25 }
 0x36a   : > { %v520_v26 = vpop.xlane.xlu0 %519 }
 0x36b   : > { %894 = vrcp.f32 %v520_v26 }
 0x375   : > { %v895_v27 = vpop.eup %894 }
 0x376   : > { %v522_v28 = vmul.f32 %v895_v27, %v893_v25 }
 0x378   : > { %523 = vst [vmem:[%s293_s11] sm:$0xff] %v522_v28 }
 0x379   : > { %995 = shalt.err (!%p992_p11)
}
 0x37a   : > { %s996_s13 = scalar_lea.hbm %s1329_s10, 128  ;;  %s1000_s24 = scalar_lea.hbm %s1383_s5, 256 }
 0x37b   : > { %p997_p0 = scmp.ne.s32.totalorder %s1329_s10, %s996_s13  ;;  %p1001_p6 = scmp.lt.u32.totalorder %s1329_s10, %s1383_s5 }
 0x37c   : > { %p1002_p7 = scmp.lt.u32.totalorder %s1000_s24, %s996_s13  ;;  %p1004_p8 = scmp.lt.u32.totalorder %s996_s13, %s1329_s10 }
 0x37d   : > { %p998_p4 = pnand %p997_p0, %p1398_p12 }
 0x37e   : > { %p1003_p2 = por %p1002_p7, %p1001_p6 }
 0x37f   : > { %p999_p13 = pneg %p998_p4 }
 0x380   : > { %p1005_p1 = por %p1004_p8, %p1003_p2 }
 0x382   : > { %p1006_p10 = pnand %p1005_p1, %p999_p13 }
 0x384   : > { %1009 = shalt.err (!%p1006_p10)
}
 0x385   : > { %814 = dma.vmem_to_hbm [thread:$0]  (%p1398_p12), %s1331_s15, 128, %s1329_s10, %s525_s25  }
 0x386 PF: > { %s550_s11 = sand.u32 1, %s1048_s18   ;;  %p1399_p3 = scmp.ne.s32.totalorder %s1391_s29, 0 }
 0x387   : > { %p1400_p5 = scmp.ge.s32.totalorder %s1068_s23, 2  ;;  %s551_s27 = scalar_lea.sflag [#allocation5], %s550_s11 }
 0x389   : > { %p828_p9 = pnand %p1400_p5, %p1399_p3 }
 0x38b   : > { %1043 = dma.done.wait (!%p828_p9), %s551_s27, 128  }
 0x38c   : > { %1045 = vsyncadd (!%p828_p9), %s551_s27, 4294967168  ;;  %s22_s23 = sadd.s32 1, %s1068_s23   ;;  %s1401_s18 = smov %s1052_s19 }
 0x38d   : > { %p19_p11 = scmp.ge.s32.totalorder %s22_s23, 4   ;;  %s1402_s19 = smov %s1056_s20 }
 0x38e   : > { %s1403_s20 = smov %s1251_s6  ;;  %s1404_s21 = smov %s1064_s22 }
 0x38f   : > { %s1405_s22 = smov %s1407_s12  ;;  %21 = sbr.rel (!%p19_p11) target bundleno = 7 (0x7), region = 102 }
 0x396   :  { %556 = vsyncpa [#allocation4], 1 }
 0x397   :  { %558 = vsyncpa [#allocation4 + $0x1], 1 }
 0x398   :  { %559 = vsyncpa [#allocation7], 1 }
 0x399   :  { %560 = vsyncpa [#allocation5], 1 }
 0x39a   :  { %562 = vsyncpa [#allocation5 + $0x1], 1 }

</bundles_post_ra>
